<compile_context>
chip_gen: v7x
topology: tpu7x:2x2x1
jax: 0.10.0
libtpu: 0.0.40
codegen_flags: <defaults>
</compile_context>

<pallas_src>
import math
from functools import partial

import jax
import jax.numpy as jnp
from jax import lax
from jax.experimental import pallas as pl
from jax.experimental.pallas import tpu as pltpu

D_MODEL = 128          # last dim -> lane axis
VOCAB_SIZE = 64
MAX_TOK_TILE = 2048    # rows per grid step (amortizes ~0.35 us/step on all gens)


def _round_up(x, m):
    return (x + m - 1) // m * m


def _cdiv(a, b):
    return (a + b - 1) // b


def embed_kernel(ids_ref, table_ref, out_ref, *, scale, rows):
    # ids_ref:   (rows_ids, 128) int32, lane-dense: ids[r, l] = token r*128 + l
    # table_ref: (V, D) float32, VMEM-resident (same block every step)
    # out_ref:   (rows*128, D)
    tbl = table_ref[...]
    vocab = tbl.shape[0]
    # Lane -> sublane relayout of the ids (cheap XLU work, hidden under the
    # output-store DMA). Column r of ids_t holds tokens r*128 .. r*128+127.
    ids_t = ids_ref[...].T                                      # (128, rows_ids)
    iota_v = lax.broadcasted_iota(jnp.int32, (128, vocab), 1)   # (128, V)
    for r in range(rows):                                       # static unroll, rows <= 16
        col = ids_t[:, r:r + 1]                                 # (128, 1)
        one_hot = (col == iota_v).astype(tbl.dtype)             # exact 0/1 rows
        # One-hot gather on the MXU; HIGHEST precision keeps f32 rows exact
        # (default precision would round them to ~bf16 accuracy).
        gathered = jnp.dot(one_hot, tbl,
                           preferred_element_type=jnp.float32,
                           precision=lax.Precision.HIGHEST)     # (128, D)
        out_ref[r * 128:(r + 1) * 128, :] = (gathered * scale).astype(out_ref.dtype)


def embedding_layer(token_ids, emb_table, out_dtype=None):
    """token_ids: (B, S) int, emb_table: (V, D) -> (B, S, D) = table[ids]*sqrt(D)."""
    B, S = token_ids.shape
    V, D = emb_table.shape
    out_dtype = emb_table.dtype if out_dtype is None else out_dtype
    n_tok = B * S
    scale = math.sqrt(D)

    # --- balanced tiling: bounded padding waste, >=2 steps when there is enough
    #     work so the "parallel" grid axis shards across TensorCores ---
    n_steps = _cdiv(n_tok, MAX_TOK_TILE)
    if n_steps == 1 and n_tok > 128:
        n_steps = 2
    tile = _round_up(_cdiv(n_tok, n_steps), 128)    # rows per step, multiple of 128
    n_pad = n_steps * tile
    rows = tile // 128                              # 128-row chunks per step
    rows_ids = max(_round_up(rows, 8), 8)           # sublane-aligned ids block

    # --- lane-dense ids layout: (n_steps * rows_ids, 128) int32 ---
    flat_ids = token_ids.reshape(-1).astype(jnp.int32)
    if n_pad != n_tok:
        flat_ids = jnp.pad(flat_ids, (0, n_pad - n_tok))        # pad with valid id 0
    ids3 = flat_ids.reshape(n_steps, rows, 128)
    if rows_ids != rows:
        ids3 = jnp.pad(ids3, ((0, 0), (0, rows_ids - rows), (0, 0)))
    ids2d = ids3.reshape(n_steps * rows_ids, 128)

    cost = pl.CostEstimate(
        flops=2 * n_pad * V * D,
        transcendentals=0,
        bytes_accessed=(n_pad * D * jnp.dtype(out_dtype).itemsize
                        + ids2d.size * 4
                        + V * D * jnp.dtype(emb_table.dtype).itemsize),
    )

    out_flat = pl.pallas_call(
        partial(embed_kernel, scale=scale, rows=rows),
        out_shape=jax.ShapeDtypeStruct((n_pad, D), out_dtype),
        grid_spec=pl.GridSpec(
            grid=(n_steps,),
            in_specs=[
                pl.BlockSpec((rows_ids, 128), lambda i: (i, 0)),  # lane-dense ids tile
                pl.BlockSpec((V, D), lambda i: (0, 0)),           # whole table, resident
            ],
            out_specs=pl.BlockSpec((tile, D), lambda i: (i, 0)),
        ),
        compiler_params=pltpu.CompilerParams(
            dimension_semantics=("parallel",)),
        cost_estimate=cost,
    )(ids2d, emb_table)

    return out_flat[:n_tok].reshape(B, S, D)


if __name__ == "__main__":
    key = jax.random.PRNGKey(0)
    k_emb, k_ids = jax.random.split(key)

    # nn.Embedding default init: N(0, 1)
    emb_table = jax.random.normal(k_emb, (VOCAB_SIZE, D_MODEL), dtype=jnp.float32)

    B, S = 2, 8
    token_ids = jax.random.randint(k_ids, (B, S), 0, VOCAB_SIZE, dtype=jnp.int32)

    out = jax.block_until_ready(embedding_layer(token_ids, emb_table))

    # correctness check against plain-JAX reference (allow ~1 ulp from MXU passes)
    ref = emb_table[token_ids] * math.sqrt(D_MODEL)
    assert out.shape == (B, S, D_MODEL)
    assert jnp.allclose(out, ref, rtol=1e-6, atol=1e-6), "mismatch vs reference"

    print("KERNEL_OK")
</pallas_src>

<mosaic_0001>
module attributes {stable_mosaic.version = 11 : i64} {
  func.func @embed_kernel(%arg0: i32, %arg1: memref<8x128xi32, #tpu.memory_space<vmem>>, %arg2: memref<64x128xf32, #tpu.memory_space<vmem>>, %arg3: memref<128x128xf32, #tpu.memory_space<vmem>>) attributes {dimension_semantics = [#tpu.dimension_semantics<parallel>], iteration_bounds = array<i64: 1>, scalar_prefetch = 0 : i64, scratch_operands = 0 : i64, tpu.core_type = #tpu.core_type<tc>, window_params = [{transform_indices = @transform_0, window_bounds = array<i64: 8, 128>}, {pipeline_mode = #tpu.pipeline_mode<synchronous>, transform_indices = @transform_1, window_bounds = array<i64: 64, 128>}, {transform_indices = @transform_2, window_bounds = array<i64: 128, 128>}]} {
    %c0 = arith.constant 0 : index
    %c0_0 = arith.constant 0 : index
    %0 = vector.load %arg2[%c0, %c0_0] : memref<64x128xf32, #tpu.memory_space<vmem>>, vector<64x128xf32>
    %c0_1 = arith.constant 0 : index
    %c0_2 = arith.constant 0 : index
    %1 = vector.load %arg1[%c0_1, %c0_2] : memref<8x128xi32, #tpu.memory_space<vmem>>, vector<8x128xi32>
    %2 = tpu.transpose %1, [1, 0] : vector<8x128xi32> -> vector<128x8xi32>
    %3 = tpu.iota {dimensions = array<i32: 1>} : vector<128x64xi32>
    %4 = vector.extract_strided_slice %2 {offsets = [0, 0], sizes = [128, 1], strides = [1, 1]} : vector<128x8xi32> to vector<128x1xi32>
    %5 = vector.broadcast %4 : vector<128x1xi32> to vector<128x64xi32>
    %6 = arith.cmpi eq, %5, %3 : vector<128x64xi32>
    %7 = arith.extui %6 : vector<128x64xi1> to vector<128x64xi32>
    %8 = arith.sitofp %7 : vector<128x64xi32> to vector<128x64xf32>
    %cst = arith.constant dense<0.000000e+00> : vector<128x128xf32>
    %9 = tpu.matmul %8, %0, %cst {dimension_numbers = #tpu.dot_dimension_numbers<[1], [0], [0], [1], [0, 0, 1, 1], [], []>, precision = #tpu.contract_precision<fp32>} : vector<128x64xf32>, vector<64x128xf32>, vector<128x128xf32> -> vector<128x128xf32>
    %cst_3 = arith.constant 11.3137083 : f32
    %10 = vector.broadcast %cst_3 : f32 to vector<128x128xf32>
    %11 = arith.mulf %9, %10 : vector<128x128xf32>
    %c0_4 = arith.constant 0 : index
    %c0_5 = arith.constant 0 : index
    %12 = vector.load %arg3[%c0_4, %c0_5] : memref<128x128xf32, #tpu.memory_space<vmem>>, vector<128x128xf32>
    tpu.vector_store %arg3[%c0_4, %c0_5], %11 {strides = array<i32>} : memref<128x128xf32, #tpu.memory_space<vmem>>, vector<128x128xf32>,
    return
  }
  func.func @transform_0(%arg0: i32) -> (i32, i32) {
    %c0_i32 = arith.constant 0 : i32
    %c0_i32_0 = arith.constant 0 : i32
    return %arg0, %c0_i32 : i32, i32
  }
  func.func @transform_1(%arg0: i32) -> (i32, i32) {
    %c0_i32 = arith.constant 0 : i32
    %c0_i32_0 = arith.constant 0 : i32
    %c0_i32_1 = arith.constant 0 : i32
    return %c0_i32, %c0_i32_0 : i32, i32
  }
  func.func @transform_2(%arg0: i32) -> (i32, i32) {
    %c0_i32 = arith.constant 0 : i32
    %c0_i32_0 = arith.constant 0 : i32
    return %arg0, %c0_i32 : i32, i32
  }
}

</mosaic_0001>

<bundles_post_ra>
// kernel: tpu_custom_call.1
= control target key start
LH: loop header
LB: loop body
LE: loop exit
PB: predicated region body
PF: predicated region fallthrough
CT: control target
= control target key end

     0   :  { %7 = vsyncpa [#allocation3], 0  ;;  %s2636_s0 = inlined_call_operand.hbm [shape: s32[8,128], index: 0, kind: input, shape index: {}]   ;;  %s2637_s1 = inlined_call_operand.hbm [shape: f32[64,128], index: 1, kind: input, shape index: {}]   ;;  %s2638_s2 = inlined_call_operand.hbm [shape: f32[128,128], index: 2, kind: output, shape index: {}]  }
   0x1   :  { %8 = vsyncpa [#allocation6], 0 }
   0x2   :  { %9 = vsyncpa [#allocation4], 0  ;;  %s2163_s9 = smov [#allocation2]   ;;  %s2164_s11 = smov [#allocation5]  }
   0x3   :  { %s16_s10 = sshll.u32 %s2163_s9, 4  ;;  %s25_s12 = sshll.u32 %s2164_s11, 4  ;;  %s17_s10 = int_to_ptr.vmem [resolvable:$true] %s16_s10  ;;  %s2185_s12 = int_to_ptr.vmem [resolvable:$true] %s25_s12 }
   0x4   :  { %s2091_s15 = scalar_lea.hbm %s2636_s0, 128 }
   0x5   :  { %p2092_p0 = scmp.ne.s32.totalorder %s2636_s0, %s2091_s15  ;;  %p2095_p1 = scmp.lt.u32.totalorder %s2091_s15, %s2636_s0 }
   0x7   :  { %p2097_p2 = pnand %p2095_p1, %p2092_p0 }
   0x9   :  { %2100 = shalt.err (!%p2097_p2)
}
   0xa   :  { %s2101_s20 = scalar_lea.vmem %s17_s10, 128  ;;  %p2106_p4 = scmp.lt.s32.totalorder %s17_s10, %s17_s10 }
   0xb   :  { %p2102_p3 = scmp.ne.s32.totalorder %s17_s10, %s2101_s20  ;;  %p2107_p5 = scmp.lt.s32.totalorder %s2101_s20, %s2101_s20 }
   0xd   :  { %p2108_p6 = por %p2107_p5, %p2106_p4 }
   0xf   :  { %p2109_p7 = pnand %p2108_p6, %p2102_p3 }
  0x11   :  { %2112 = shalt.err (!%p2109_p7)
}
  0x12   :  { %19 = dma.hbm_to_vmem [thread:$0]  %s2636_s0, 128, %s17_s10, [#allocation3]  }
  0x13   :  { %s2113_s25 = scalar_lea.hbm %s2637_s1, 1024 }
  0x14   :  { %p2114_p8 = scmp.ne.s32.totalorder %s2637_s1, %s2113_s25  ;;  %p2117_p9 = scmp.lt.u32.totalorder %s2113_s25, %s2637_s1 }
  0x16   :  { %p2119_p10 = pnand %p2117_p9, %p2114_p8 }
  0x18   :  { %2122 = shalt.err (!%p2119_p10)
}
  0x19   :  { %s2123_s30 = scalar_lea.vmem %s2185_s12, 1024  ;;  %p2128_p12 = scmp.lt.s32.totalorder %s2185_s12, %s2185_s12 }
  0x1a   :  { %p2124_p11 = scmp.ne.s32.totalorder %s2185_s12, %s2123_s30  ;;  %p2129_p13 = scmp.lt.s32.totalorder %s2123_s30, %s2123_s30 }
  0x1c   :  { %p2130_p0 = por %p2129_p13, %p2128_p12 }
  0x1e   :  { %p2131_p1 = pnand %p2130_p0, %p2124_p11 }
  0x20   :  { %2134 = shalt.err (!%p2131_p1)
}
  0x21   :  { %s2165_s0 = smov 128   ;;  %s2166_s3 = smov 8  }
  0x22   :  { %31 = dma.hbm_to_vmem [thread:$0]  %s2637_s1, 1024, %s2185_s12, [#allocation6], %s2165_s0, %s2165_s0, %s2166_s3  }
  0x23   :  { %2157 = dma.done.wait [#allocation3], 128  }
  0x24   :  { %2158 = vsyncadd [#allocation3], 4294967168 }
  0x25   :  { %2159 = dma.done.wait [#allocation6], 1024  }
  0x26   :  { %2160 = vsyncadd [#allocation6], 4294966272  ;;  %v2167_v0 = vmov 0   ;;  %v46_v1 = vld [vmem:[#allocation2] sm:$0xff]  ;;  %v38_v2 = vld [vmem:[#allocation5] sm:$0xff]  ;;  %vm177_vm0 = vcmask 523264  }
  0x27   :  { %2090 = vset.pattern.permute.xlu1 %v2167_v0  ;;  %47 = vxpose.xlu0.b32.start.end [1/1] (short) %v46_v1, 128  ;;  %v39_v3 = vld [vmem:[#allocation5 + $0x8] sm:$0xff]  ;;  %v227_v4 = vand.u32 4294901760, %v38_v2  ;;  %v2225_v7 = vld [vmem:[#allocation5 + $0x10] sm:$0xff]  ;;  %v2227_v8 = vld [vmem:[#allocation5 + $0x18] sm:$0xff]  ;;  %s2169_s1 = smov [#allocation7]  }
  0x28   :  { %v230_v5 = vand.u32 4294901760, %v39_v3  ;;  %v233_v9 = vand.u32 4294901760, %v2225_v7  ;;  %v236_v10 = vand.u32 4294901760, %v2227_v8  ;;  %v2237_v12 = vld [vmem:[#allocation5 + $0x20] sm:$0xff]  ;;  %v2239_v13 = vld [vmem:[#allocation5 + $0x28] sm:$0xff]  ;;  %v2253_v18 = vld [vmem:[#allocation5 + $0x30] sm:$0xff] }
  0x29   :  { %v239_v15 = vand.u32 4294901760, %v2237_v12  ;;  %v242_v16 = vand.u32 4294901760, %v2239_v13  ;;  %v2255_v19 = vld [vmem:[#allocation5 + $0x38] sm:$0xff]  ;;  %v245_v21 = vand.u32 4294901760, %v2253_v18  ;;  %v461_v34 = vsub.f32 %v38_v2, %v227_v4  ;;  %s1445_s6 = sshll.u32 %s2169_s1, 4  ;;  %s1446_s6 = int_to_ptr.vmem [resolvable:$true] %s1445_s6 }
  0x2a   :  { %v2219_v6 = vpack.c.bf16 %v230_v5, %v227_v4  ;;  %v2235_v11 = vpack.c.bf16 %v236_v10, %v233_v9  ;;  %v248_v22 = vand.u32 4294901760, %v2255_v19  ;;  %v468_v35 = vsub.f32 %v39_v3, %v230_v5  ;;  %s2135_s7 = scalar_lea.vmem %s1446_s6, 2048  ;;  %p2140_p3 = scmp.lt.s32.totalorder %s1446_s6, %s1446_s6 }
  0x2b   :  { %v2250_v17 = vpack.c.bf16 %v242_v16, %v239_v15  ;;  %v462_v36 = vand.u32 4294901760, %v461_v34  ;;  %v475_v46 = vsub.f32 %v2225_v7, %v233_v9  ;;  %v482_v47 = vsub.f32 %v2227_v8, %v236_v10  ;;  %p2136_p2 = scmp.ne.s32.totalorder %s1446_s6, %s2135_s7  ;;  %p2141_p4 = scmp.lt.s32.totalorder %s2135_s7, %s2135_s7 }
  0x2c   :  { %1955 = vmatprep.subr.bf16.mxu0 %v2219_v6  ;;  %1907 = vmatprep.subr.bf16.mxu1 %v2219_v6  ;;  %v2266_v23 = vpack.c.bf16 %v248_v22, %v245_v21  ;;  %v469_v37 = vand.u32 4294901760, %v468_v35  ;;  %v489_v56 = vsub.f32 %v2237_v12, %v239_v15  ;;  %v496_v57 = vsub.f32 %v2239_v13, %v242_v16 }
  0x2d   :  { %1957 = vmatpush3.bf16.msra.mxu0 %v2219_v6  ;;  %1909 = vmatpush3.bf16.msra.mxu1 %v2219_v6  ;;  %v463_v39 = vsub.f32 %v461_v34, %v462_v36  ;;  %v476_v48 = vand.u32 4294901760, %v475_v46  ;;  %v483_v49 = vand.u32 4294901760, %v482_v47  ;;  %v503_v1 = vsub.f32 %v2253_v18, %v245_v21  ;;  %p2142_p5 = por %p2141_p4, %p2140_p3 }
  0x2e   :  { %1959 = vmatprep.subr.bf16.mxu0 %v2235_v11  ;;  %1911 = vmatprep.subr.bf16.mxu1 %v2235_v11  ;;  %v470_v40 = vsub.f32 %v468_v35, %v469_v37  ;;  %v2273_v41 = vpack.c.bf16 %v469_v37, %v462_v36  ;;  %v490_v60 = vand.u32 4294901760, %v489_v56  ;;  %v497_v61 = vand.u32 4294901760, %v496_v57 }
  0x2f   :  { %v464_v42 = vand.u32 4294901760, %v463_v39  ;;  %v477_v51 = vsub.f32 %v475_v46, %v476_v48  ;;  %v484_v52 = vsub.f32 %v482_v47, %v483_v49  ;;  %v2285_v53 = vpack.c.bf16 %v483_v49, %v476_v48  ;;  %p2143_p6 = pnand %p2142_p5, %p2136_p2 }
  0x30   :  { %v471_v43 = vand.u32 4294901760, %v470_v40  ;;  %v491_v62 = vsub.f32 %v489_v56, %v490_v60  ;;  %v498_v63 = vsub.f32 %v496_v57, %v497_v61  ;;  %v510_v2 = vsub.f32 %v2255_v19, %v248_v22 }
  0x31   :  { %1961 = vmatpush3.bf16.msra.mxu0 %v2235_v11  ;;  %1913 = vmatpush3.bf16.msra.mxu1 %v2235_v11  ;;  %v478_v54 = vand.u32 4294901760, %v477_v51  ;;  %v485_v55 = vand.u32 4294901760, %v484_v52  ;;  %v504_v5 = vand.u32 4294901760, %v503_v1  ;;  %v2309_v16 = vpack.c.bf16 %v468_v35, %v461_v34 }
  0x32   :  { %1963 = vmatprep.subr.bf16.mxu0 %v2250_v17  ;;  %1915 = vmatprep.subr.bf16.mxu1 %v2250_v17  ;;  %v2276_v45 = vpack.c.bf16 %v471_v43, %v464_v42  ;;  %v492_v3 = vand.u32 4294901760, %v491_v62  ;;  %v499_v4 = vand.u32 4294901760, %v498_v63  ;;  %v511_v7 = vand.u32 4294901760, %v510_v2 }
  0x33   :  { %v2293_v59 = vpack.c.bf16 %v485_v55, %v478_v54  ;;  %v505_v9 = vsub.f32 %v503_v1, %v504_v5  ;;  %v2311_v18 = vpack.c.bf16 %v482_v47, %v475_v46  ;;  %v2315_v19 = vpack.c.bf16 %v510_v2, %v503_v1 }
  0x34   :  { %v2303_v8 = vpack.c.bf16 %v499_v4, %v492_v3  ;;  %v512_v10 = vsub.f32 %v510_v2, %v511_v7  ;;  %v2305_v12 = vpack.c.bf16 %v511_v7, %v504_v5  ;;  %v79_v21 = vlaneseq }
  0x35   :  { %1965 = vmatpush3.bf16.msra.mxu0 %v2250_v17  ;;  %1917 = vmatpush3.bf16.msra.mxu1 %v2250_v17  ;;  %v506_v13 = vand.u32 4294901760, %v505_v9 }
  0x36   :  { %1967 = vmatprep.subr.bf16.mxu0 %v2266_v23  ;;  %1919 = vmatprep.subr.bf16.mxu1 %v2266_v23  ;;  %v2317_v22 = vand.u32 127, %v79_v21 }
  0x39   :  { %1969 = vmatpush3.bf16.msra.mxu0 %v2266_v23  ;;  %1921 = vmatpush3.bf16.msra.mxu1 %v2266_v23 }
  0x3a   :  { %1971 = vmatprep.subr.bf16.mxu0 %v2273_v41  ;;  %1923 = vmatprep.subr.bf16.mxu1 %v2276_v45 }
  0x50   :  { %2089 = vset.pattern.permute.xlu0 %v2167_v0  ;;  %v2295_v0 = vpack.c.bf16 %v497_v61, %v490_v60 }
  0xa7   :  { %v63_v14 = vpop.trf.xlu0 }
  0xa8   :  { %82 = vperm.xlu0 %2089, %v63_v14   ;;  %v513_v14 = vand.u32 4294901760, %v512_v10 }
  0xaa   :  { %v2307_v15 = vpack.c.bf16 %v513_v14, %v506_v13 }
  0xab   :  { %v64_v20 = vpop.trf.xlu0 }
  0xac   :  { %85 = vperm.xlu1 %2090, %v64_v20   ;;  %v2313_v20 = vpack.c.bf16 %v496_v57, %v489_v56 }
  0xaf   :  { %v65_v24 = vpop.trf.xlu0 }
  0xb0   :  { %88 = vperm.xlu1 %2090, %v65_v24  }
  0xb3   :  { %v66_v25 = vpop.trf.xlu0 }
  0xb4   :  { %91 = vperm.xlu1 %2090, %v66_v25   ;;  %v2168_v25 = vmov 0.0  }
  0xb7   :  { %v67_v26 = vpop.trf.xlu0 }
  0xb8   :  { %94 = vperm.xlu1 %2090, %v67_v26  }
  0xbb   :  { %v68_v27 = vpop.trf.xlu0 }
  0xbc   :  { %97 = vperm.xlu1 %2090, %v68_v27  }
  0xbf   :  { %v69_v28 = vpop.trf.xlu0 }
  0xc0   :  { %100 = vperm.xlu1 %2090, %v69_v28  }
  0xc3   :  { %v70_v29 = vpop.trf.xlu0 }
  0xc4   :  { %103 = vperm.xlu1 %2090, %v70_v29  }
  0xc7   :  { %v71_v30 = vpop.trf.xlu0 }
  0xc8   :  { %106 = vperm.xlu1 %2090, %v71_v30  }
  0xcb   :  { %v72_v31 = vpop.trf.xlu0 }
  0xcc   :  { %109 = vperm.xlu1 %2090, %v72_v31  }
  0xcf   :  { %v73_v32 = vpop.trf.xlu0 }
  0xd0   :  { %112 = vperm.xlu1 %2090, %v73_v32  }
  0xd3   :  { %v74_v33 = vpop.trf.xlu0 }
  0xd4   :  { %115 = vperm.xlu1 %2090, %v74_v33  }
  0xd7   :  { %v75_v38 = vpop.trf.xlu0 }
  0xd8   :  { %118 = vperm.xlu1 %2090, %v75_v38  }
  0xdb   :  { %v76_v44 = vpop.trf.xlu0 }
  0xdc   :  { %121 = vperm.xlu1 %2090, %v76_v44  }
  0xdf   :  { %v77_v50 = vpop.trf.xlu0 }
  0xe0   :  { %124 = vperm.xlu1 %2090, %v77_v50  }
  0xe3   :  { %v78_v58 = vpop.trf.xlu0 }
  0xe4   :  { %127 = vperm.xlu1 %2090, %v78_v58  }
 0x127   :  { %v83_v24 = vpop.permute.xlu0 %82 }
 0x128   :  { %vm129_vm1 = vcmp.eq.s32.totalorder %v83_v24, %v2317_v22 }
 0x129   :  { %v2321_v26 = vsel %vm129_vm1, 1.0, %v2168_v25 }
 0x12a   :  { %v179_v27 = vsel %vm177_vm0, %v2321_v26, 0 }
 0x12b   :  { %v2325_v28 = vsub.f32 %v179_v27, %v179_v27  ;;  %v86_v29 = vpop.permute.xlu1 %85 }
 0x12c   :  { %vm130_vm2 = vcmp.eq.s32.totalorder %v86_v29, %v2317_v22 }
 0x12d   :  { %v2329_v30 = vsel %vm130_vm2, 1.0, %v2168_v25  ;;  %v301_v31 = vand.u32 4294901760, %v2325_v28 }
 0x12e   :  { %v182_v32 = vsel %vm177_vm0, %v2329_v30, 0 }
 0x12f   :  { %v2334_v33 = vsub.f32 %v182_v32, %v182_v32  ;;  %v89_v34 = vpop.permute.xlu1 %88  ;;  %1802 = vmatprep.mubr.f32.mxu0 %v301_v31  ;;  %v302_v35 = vsub.f32 %v2325_v28, %v301_v31 }
 0x130   :  { %vm131_vm3 = vcmp.eq.s32.totalorder %v89_v34, %v2317_v22 }
 0x131   :  { %v2339_v36 = vsel %vm131_vm3, 1.0, %v2168_v25  ;;  %v303_v37 = vand.u32 4294901760, %v302_v35  ;;  %v311_v38 = vand.u32 4294901760, %v2334_v33 }
 0x132   :  { %v185_v39 = vsel %vm177_vm0, %v2339_v36, 0 }
 0x133   :  { %v2344_v40 = vsub.f32 %v185_v39, %v185_v39  ;;  %v92_v42 = vpop.permute.xlu1 %91  ;;  %1682 = vmatprep.mubr.f32.mxu1 %v303_v37  ;;  %1803 = vmatmul.mubr.f32.vlgmr.msra.gmra.mrb[0].mxu0 %v311_v38  ;;  %v312_v43 = vsub.f32 %v2334_v33, %v311_v38 }
 0x134   :  { %vm132_vm4 = vcmp.eq.s32.totalorder %v92_v42, %v2317_v22  ;;  %1973 = vmatpush3.bf16.msra.mxu0 %v2273_v41 }
 0x135   :  { %v2350_v44 = vsel %vm132_vm4, 1.0, %v2168_v25  ;;  %v313_v46 = vand.u32 4294901760, %v312_v43  ;;  %v321_v47 = vand.u32 4294901760, %v2344_v40  ;;  %1975 = vmatprep.subr.bf16.mxu0 %v2285_v53 }
 0x136   :  { %v188_v48 = vsel %vm177_vm0, %v2350_v44, 0 }
 0x137   :  { %v2356_v49 = vsub.f32 %v188_v48, %v188_v48  ;;  %v95_v50 = vpop.permute.xlu1 %94  ;;  %1683 = vmatmul.mubr.f32.vlgmr.msra.gmra.mrb[0].mxu1 %v313_v46  ;;  %1805 = vmatprep.mubr.f32.mxu0 %v321_v47  ;;  %v322_v51 = vsub.f32 %v2344_v40, %v321_v47 }
 0x138   :  { %vm133_vm5 = vcmp.eq.s32.totalorder %v95_v50, %v2317_v22  ;;  %1925 = vmatpush3.bf16.msra.mxu1 %v2276_v45  ;;  %1977 = vmatpush3.bf16.msra.mxu0 %v2285_v53 }
 0x139   :  { %v2363_v41 = vsel %vm133_vm5, 1.0, %v2168_v25  ;;  %v323_v52 = vand.u32 4294901760, %v322_v51  ;;  %v331_v54 = vand.u32 4294901760, %v2356_v49  ;;  %1927 = vmatprep.subr.bf16.mxu1 %v2293_v59  ;;  %1979 = vmatprep.subr.bf16.mxu0 %v2295_v0 }
 0x13a   :  { %v191_v55 = vsel %vm177_vm0, %v2363_v41, 0 }
 0x13b   :  { %v2370_v56 = vsub.f32 %v191_v55, %v191_v55  ;;  %v98_v57 = vpop.permute.xlu1 %97  ;;  %1685 = vmatprep.mubr.f32.mxu1 %v323_v52  ;;  %1806 = vmatmul.mubr.f32.gmra.mrb[2].mxu0 %v331_v54  ;;  %v332_v45 = vsub.f32 %v2356_v49, %v331_v54 }
 0x13c   :  { %vm134_vm6 = vcmp.eq.s32.totalorder %v98_v57, %v2317_v22  ;;  %1929 = vmatpush3.bf16.msra.mxu1 %v2293_v59  ;;  %1981 = vmatpush3.bf16.msra.mxu0 %v2295_v0 }
 0x13d   :  { %v2377_v53 = vsel %vm134_vm6, 1.0, %v2168_v25  ;;  %v333_v58 = vand.u32 4294901760, %v332_v45  ;;  %v341_v60 = vand.u32 4294901760, %v2370_v56  ;;  %1931 = vmatprep.subr.bf16.mxu1 %v2303_v8  ;;  %1983 = vmatprep.subr.bf16.mxu0 %v2305_v12 }
 0x13e   :  { %v194_v61 = vsel %vm177_vm0, %v2377_v53, 0 }
 0x13f   :  { %v2384_v62 = vsub.f32 %v194_v61, %v194_v61  ;;  %v101_v63 = vpop.permute.xlu1 %100  ;;  %1686 = vmatmul.mubr.f32.gmra.mrb[2].mxu1 %v333_v58  ;;  %1808 = vmatprep.mubr.f32.mxu0 %v341_v60  ;;  %v342_v59 = vsub.f32 %v2370_v56, %v341_v60 }
 0x140   :  { %vm135_vm7 = vcmp.eq.s32.totalorder %v101_v63, %v2317_v22  ;;  %1933 = vmatpush3.bf16.msra.mxu1 %v2303_v8  ;;  %1985 = vmatpush3.bf16.msra.mxu0 %v2305_v12 }
 0x141   :  { %v2391_v0 = vsel %vm135_vm7, 1.0, %v2168_v25  ;;  %v343_v1 = vand.u32 4294901760, %v342_v59  ;;  %v351_v2 = vand.u32 4294901760, %v2384_v62  ;;  %1935 = vmatprep.subr.bf16.mxu1 %v2307_v15  ;;  %1987 = vmatprep.subr.bf16.mxu0 %v2219_v6 }
 0x142   :  { %v197_v3 = vsel %vm177_vm0, %v2391_v0, 0 }
 0x143   :  { %v2398_v4 = vsub.f32 %v197_v3, %v197_v3  ;;  %v104_v5 = vpop.permute.xlu1 %103  ;;  %1688 = vmatprep.mubr.f32.mxu1 %v343_v1  ;;  %1809 = vmatmul.mubr.f32.gmra.mrb[4].mxu0 %v351_v2  ;;  %v352_v7 = vsub.f32 %v2384_v62, %v351_v2 }
 0x144   :  { %vm136_vm8 = vcmp.eq.s32.totalorder %v104_v5, %v2317_v22  ;;  %1937 = vmatpush3.bf16.msra.mxu1 %v2307_v15 }
 0x145   :  { %v2404_v8 = vsel %vm136_vm8, 1.0, %v2168_v25  ;;  %v353_v9 = vand.u32 4294901760, %v352_v7  ;;  %v361_v10 = vand.u32 4294901760, %v2398_v4  ;;  %1939 = vmatprep.subr.bf16.mxu1 %v2309_v16 }
 0x146   :  { %v200_v12 = vsel %vm177_vm0, %v2404_v8, 0 }
 0x147   :  { %v2410_v13 = vsub.f32 %v200_v12, %v200_v12  ;;  %v107_v14 = vpop.permute.xlu1 %106  ;;  %1689 = vmatmul.mubr.f32.gmra.mrb[4].mxu1 %v353_v9  ;;  %1811 = vmatprep.mubr.f32.mxu0 %v361_v10  ;;  %v362_v21 = vsub.f32 %v2398_v4, %v361_v10 }
 0x148   :  { %vm137_vm9 = vcmp.eq.s32.totalorder %v107_v14, %v2317_v22 }
 0x149   :  { %v2415_v15 = vsel %vm137_vm9, 1.0, %v2168_v25  ;;  %v363_v24 = vand.u32 4294901760, %v362_v21  ;;  %v371_v27 = vand.u32 4294901760, %v2410_v13 }
 0x14a   :  { %v203_v29 = vsel %vm177_vm0, %v2415_v15, 0 }
 0x14b   :  { %v2420_v31 = vsub.f32 %v203_v29, %v203_v29  ;;  %v110_v32 = vpop.permute.xlu1 %109  ;;  %1691 = vmatprep.mubr.f32.mxu1 %v363_v24  ;;  %1812 = vmatmul.mubr.f32.gmra.mrb[6].mxu0 %v371_v27  ;;  %v372_v34 = vsub.f32 %v2410_v13, %v371_v27 }
 0x14c   :  { %vm138_vm10 = vcmp.eq.s32.totalorder %v110_v32, %v2317_v22 }
 0x14d   :  { %v2425_v35 = vsel %vm138_vm10, 1.0, %v2168_v25  ;;  %v373_v37 = vand.u32 4294901760, %v372_v34  ;;  %v381_v38 = vand.u32 4294901760, %v2420_v31 }
 0x14e   :  { %v206_v39 = vsel %vm177_vm0, %v2425_v35, 0 }
 0x14f   :  { %v2430_v42 = vsub.f32 %v206_v39, %v206_v39  ;;  %v113_v43 = vpop.permute.xlu1 %112  ;;  %1692 = vmatmul.mubr.f32.gmra.mrb[6].mxu1 %v373_v37  ;;  %1814 = vmatprep.mubr.f32.mxu0 %v381_v38  ;;  %v382_v46 = vsub.f32 %v2420_v31, %v381_v38 }
 0x150   :  { %vm139_vm11 = vcmp.eq.s32.totalorder %v113_v43, %v2317_v22 }
 0x151   :  { %v2435_v47 = vsel %vm139_vm11, 1.0, %v2168_v25  ;;  %v383_v48 = vand.u32 4294901760, %v382_v46  ;;  %v391_v50 = vand.u32 4294901760, %v2430_v42 }
 0x152   :  { %v209_v51 = vsel %vm177_vm0, %v2435_v47, 0 }
 0x153   :  { %v2440_v52 = vsub.f32 %v209_v51, %v209_v51  ;;  %v116_v54 = vpop.permute.xlu1 %115  ;;  %1694 = vmatprep.mubr.f32.mxu1 %v383_v48  ;;  %1815 = vmatmul.mubr.f32.gmra.mrb[8].mxu0 %v391_v50  ;;  %v392_v55 = vsub.f32 %v2430_v42, %v391_v50 }
 0x154   :  { %vm140_vm12 = vcmp.eq.s32.totalorder %v116_v54, %v2317_v22 }
 0x155   :  { %v2445_v57 = vsel %vm140_vm12, 1.0, %v2168_v25  ;;  %v393_v45 = vand.u32 4294901760, %v392_v55  ;;  %v401_v58 = vand.u32 4294901760, %v2440_v52 }
 0x156   :  { %v212_v60 = vsel %vm177_vm0, %v2445_v57, 0 }
 0x157   :  { %v2450_v61 = vsub.f32 %v212_v60, %v212_v60  ;;  %v119_v63 = vpop.permute.xlu1 %118  ;;  %1695 = vmatmul.mubr.f32.gmra.mrb[8].mxu1 %v393_v45  ;;  %1817 = vmatprep.mubr.f32.mxu0 %v401_v58  ;;  %v402_v59 = vsub.f32 %v2440_v52, %v401_v58 }
 0x158   :  { %vm141_vm13 = vcmp.eq.s32.totalorder %v119_v63, %v2317_v22 }
 0x159   :  { %v2455_v1 = vsel %vm141_vm13, 1.0, %v2168_v25  ;;  %v403_v2 = vand.u32 4294901760, %v402_v59  ;;  %v411_v3 = vand.u32 4294901760, %v2450_v61 }
 0x15a   :  { %v215_v5 = vsel %vm177_vm0, %v2455_v1, 0 }
 0x15b   :  { %v2460_v7 = vsub.f32 %v215_v5, %v215_v5  ;;  %v122_v9 = vpop.permute.xlu1 %121  ;;  %1697 = vmatprep.mubr.f32.mxu1 %v403_v2  ;;  %1818 = vmatmul.mubr.f32.gmra.mrb[10].mxu0 %v411_v3  ;;  %v412_v10 = vsub.f32 %v2450_v61, %v411_v3 }
 0x15c   :  { %vm142_vm14 = vcmp.eq.s32.totalorder %v122_v9, %v2317_v22 }
 0x15d   :  { %v2465_v12 = vsel %vm142_vm14, 1.0, %v2168_v25  ;;  %v413_v14 = vand.u32 4294901760, %v412_v10  ;;  %v421_v21 = vand.u32 4294901760, %v2460_v7 }
 0x15e   :  { %v218_v24 = vsel %vm177_vm0, %v2465_v12, 0 }
 0x15f   :  { %v2470_v27 = vsub.f32 %v218_v24, %v218_v24  ;;  %v125_v29 = vpop.permute.xlu1 %124  ;;  %1698 = vmatmul.mubr.f32.gmra.mrb[10].mxu1 %v413_v14  ;;  %1820 = vmatprep.mubr.f32.mxu0 %v421_v21  ;;  %v422_v32 = vsub.f32 %v2460_v7, %v421_v21 }
 0x160   :  { %vm143_vm15 = vcmp.eq.s32.totalorder %v125_v29, %v2317_v22 }
 0x161   :  { %v2475_v34 = vsel %vm143_vm15, 1.0, %v2168_v25  ;;  %v423_v37 = vand.u32 4294901760, %v422_v32  ;;  %v431_v38 = vand.u32 4294901760, %v2470_v27 }
 0x162   :  { %v221_v39 = vsel %vm177_vm0, %v2475_v34, 0 }
 0x163   :  { %v2480_v43 = vsub.f32 %v221_v39, %v221_v39  ;;  %v128_v46 = vpop.permute.xlu1 %127  ;;  %1700 = vmatprep.mubr.f32.mxu1 %v423_v37  ;;  %1821 = vmatmul.mubr.f32.gmra.mrb[12].mxu0 %v431_v38  ;;  %v432_v48 = vsub.f32 %v2470_v27, %v431_v38 }
 0x164   :  { %vm144_vm1 = vcmp.eq.s32.totalorder %v128_v46, %v2317_v22 }
 0x165   :  { %v2485_v50 = vsel %vm144_vm1, 1.0, %v2168_v25  ;;  %v433_v51 = vand.u32 4294901760, %v432_v48  ;;  %v441_v54 = vand.u32 4294901760, %v2480_v43 }
 0x166   :  { %v224_v55 = vsel %vm177_vm0, %v2485_v50, 0 }
 0x167   :  { %v2490_v45 = vsub.f32 %v224_v55, %v224_v55  ;;  %1701 = vmatmul.mubr.f32.gmra.mrb[12].mxu1 %v433_v51  ;;  %1823 = vmatprep.mubr.f32.mxu0 %v441_v54  ;;  %v442_v58 = vsub.f32 %v2480_v43, %v441_v54 }
 0x169   :  { %v443_v60 = vand.u32 4294901760, %v442_v58  ;;  %v451_v63 = vand.u32 4294901760, %v2490_v45 }
 0x16b   :  { %1703 = vmatprep.mubr.f32.mxu1 %v443_v60  ;;  %1824 = vmatmul.mubr.f32.gmra.mrb[14].mxu0 %v451_v63  ;;  %v452_v22 = vsub.f32 %v2490_v45, %v451_v63 }
 0x16c   :  { %1842 = vmatprep.mubr.msk.f32.mxu0 %vm177_vm0, %v2321_v26 }
 0x16d   :  { %v453_v25 = vand.u32 4294901760, %v452_v22 }
 0x16f   :  { %1704 = vmatmul.mubr.f32.gmra.mrb[14].mxu1 %v453_v25  ;;  %1843 = vmatmul.mubr.msk.f32.vlgmr.msra.gmra.mrb[0].mxu0 %vm177_vm0, %v2329_v30 }
 0x170   :  { %1722 = vmatprep.mubr.msk.f32.mxu1 %vm177_vm0, %v2321_v26  ;;  %1845 = vmatprep.mubr.msk.f32.mxu0 %vm177_vm0, %v2339_v36 }
 0x171   :  { %1989 = vmatpush3.bf16.msra.mxu0 %v2219_v6 }
 0x172   :  { %1991 = vmatprep.subr.bf16.mxu0 %v2235_v11 }
 0x173   :  { %1723 = vmatmul.mubr.msk.f32.vlgmr.msra.gmra.mrb[0].mxu1 %vm177_vm0, %v2329_v30  ;;  %1846 = vmatmul.mubr.msk.f32.gmra.mrb[2].mxu0 %vm177_vm0, %v2350_v44 }
 0x174   :  { %1941 = vmatpush3.bf16.msra.mxu1 %v2309_v16  ;;  %1725 = vmatprep.mubr.msk.f32.mxu1 %vm177_vm0, %v2339_v36 }
 0x175   :  { %1848 = vmatprep.mubr.msk.f32.mxu0 %vm177_vm0, %v2363_v41  ;;  %1943 = vmatprep.subr.bf16.mxu1 %v2311_v18 }
 0x176   :  { %1993 = vmatpush3.bf16.msra.mxu0 %v2235_v11 }
 0x177   :  { %1726 = vmatmul.mubr.msk.f32.gmra.mrb[2].mxu1 %vm177_vm0, %v2350_v44  ;;  %1849 = vmatmul.mubr.msk.f32.gmra.mrb[4].mxu0 %vm177_vm0, %v2377_v53 }
 0x178   :  { %1728 = vmatprep.mubr.msk.f32.mxu1 %vm177_vm0, %v2363_v41  ;;  %1851 = vmatprep.mubr.msk.f32.mxu0 %vm177_vm0, %v2391_v0 }
 0x179   :  { %1945 = vmatpush3.bf16.msra.mxu1 %v2311_v18  ;;  %1995 = vmatprep.subr.bf16.mxu0 %v2250_v17 }
 0x17a   :  { %1947 = vmatprep.subr.bf16.mxu1 %v2313_v20  ;;  %1997 = vmatpush3.bf16.msra.mxu0 %v2250_v17 }
 0x17b   :  { %1729 = vmatmul.mubr.msk.f32.gmra.mrb[4].mxu1 %vm177_vm0, %v2377_v53  ;;  %1852 = vmatmul.mubr.msk.f32.gmra.mrb[6].mxu0 %vm177_vm0, %v2404_v8 }
 0x17c   :  { %1731 = vmatprep.mubr.msk.f32.mxu1 %vm177_vm0, %v2391_v0  ;;  %1854 = vmatprep.mubr.msk.f32.mxu0 %vm177_vm0, %v2415_v15 }
 0x17d   :  { %1949 = vmatpush3.bf16.msra.mxu1 %v2313_v20  ;;  %1999 = vmatprep.subr.bf16.mxu0 %v2266_v23 }
 0x17e   :  { %1951 = vmatprep.subr.bf16.mxu1 %v2315_v19  ;;  %2001 = vmatpush3.bf16.msra.mxu0 %v2266_v23 }
 0x17f   :  { %1732 = vmatmul.mubr.msk.f32.gmra.mrb[6].mxu1 %vm177_vm0, %v2404_v8  ;;  %1855 = vmatmul.mubr.msk.f32.gmra.mrb[8].mxu0 %vm177_vm0, %v2425_v35 }
 0x180   :  { %1734 = vmatprep.mubr.msk.f32.mxu1 %vm177_vm0, %v2415_v15  ;;  %1857 = vmatprep.mubr.msk.f32.mxu0 %vm177_vm0, %v2435_v47 }
 0x181   :  { %1953 = vmatpush3.bf16.msra.mxu1 %v2315_v19 }
 0x183   :  { %1735 = vmatmul.mubr.msk.f32.gmra.mrb[8].mxu1 %vm177_vm0, %v2425_v35  ;;  %1858 = vmatmul.mubr.msk.f32.gmra.mrb[10].mxu0 %vm177_vm0, %v2445_v57 }
 0x184   :  { %1737 = vmatprep.mubr.msk.f32.mxu1 %vm177_vm0, %v2435_v47  ;;  %1860 = vmatprep.mubr.msk.f32.mxu0 %vm177_vm0, %v2455_v1 }
 0x187   :  { %1738 = vmatmul.mubr.msk.f32.gmra.mrb[10].mxu1 %vm177_vm0, %v2445_v57  ;;  %1861 = vmatmul.mubr.msk.f32.gmra.mrb[12].mxu0 %vm177_vm0, %v2465_v12 }
 0x188   :  { %1740 = vmatprep.mubr.msk.f32.mxu1 %vm177_vm0, %v2455_v1  ;;  %1863 = vmatprep.mubr.msk.f32.mxu0 %vm177_vm0, %v2475_v34 }
 0x18b   :  { %1741 = vmatmul.mubr.msk.f32.gmra.mrb[12].mxu1 %vm177_vm0, %v2465_v12  ;;  %1864 = vmatmul.mubr.msk.f32.gmra.mrb[14].mxu0 %vm177_vm0, %v2485_v50 }
 0x18c   :  { %1743 = vmatprep.mubr.msk.f32.mxu1 %vm177_vm0, %v2475_v34  ;;  %1882 = vmatprep.mubr.msk.f32.mxu0 %vm177_vm0, %v2321_v26 }
 0x18f   :  { %1744 = vmatmul.mubr.msk.f32.gmra.mrb[14].mxu1 %vm177_vm0, %v2485_v50  ;;  %1883 = vmatmul.mubr.msk.f32.vlgmr.msra.gmra.mrb[0].mxu0 %vm177_vm0, %v2329_v30 }
 0x190   :  { %1762 = vmatprep.mubr.f32.mxu1 %v2325_v28  ;;  %1885 = vmatprep.mubr.msk.f32.mxu0 %vm177_vm0, %v2339_v36 }
 0x193   :  { %1763 = vmatmul.mubr.f32.vlgmr.msra.gmra.mrb[0].mxu1 %v2334_v33  ;;  %1886 = vmatmul.mubr.msk.f32.gmra.mrb[2].mxu0 %vm177_vm0, %v2350_v44 }
 0x194   :  { %1765 = vmatprep.mubr.f32.mxu1 %v2344_v40  ;;  %1888 = vmatprep.mubr.msk.f32.mxu0 %vm177_vm0, %v2363_v41 }
 0x197   :  { %1766 = vmatmul.mubr.f32.gmra.mrb[2].mxu1 %v2356_v49  ;;  %1889 = vmatmul.mubr.msk.f32.gmra.mrb[4].mxu0 %vm177_vm0, %v2377_v53 }
 0x198   :  { %1768 = vmatprep.mubr.f32.mxu1 %v2370_v56  ;;  %1891 = vmatprep.mubr.msk.f32.mxu0 %vm177_vm0, %v2391_v0 }
 0x19b   :  { %1769 = vmatmul.mubr.f32.gmra.mrb[4].mxu1 %v2384_v62  ;;  %1892 = vmatmul.mubr.msk.f32.gmra.mrb[6].mxu0 %vm177_vm0, %v2404_v8 }
 0x19c   :  { %1771 = vmatprep.mubr.f32.mxu1 %v2398_v4  ;;  %1894 = vmatprep.mubr.msk.f32.mxu0 %vm177_vm0, %v2415_v15 }
 0x19f   :  { %1772 = vmatmul.mubr.f32.gmra.mrb[6].mxu1 %v2410_v13  ;;  %1895 = vmatmul.mubr.msk.f32.gmra.mrb[8].mxu0 %vm177_vm0, %v2425_v35 }
 0x1a0   :  { %1774 = vmatprep.mubr.f32.mxu1 %v2420_v31  ;;  %1897 = vmatprep.mubr.msk.f32.mxu0 %vm177_vm0, %v2435_v47 }
 0x1a3   :  { %1775 = vmatmul.mubr.f32.gmra.mrb[8].mxu1 %v2430_v42  ;;  %1898 = vmatmul.mubr.msk.f32.gmra.mrb[10].mxu0 %vm177_vm0, %v2445_v57 }
 0x1a4   :  { %1777 = vmatprep.mubr.f32.mxu1 %v2440_v52  ;;  %1900 = vmatprep.mubr.msk.f32.mxu0 %vm177_vm0, %v2455_v1 }
 0x1a7   :  { %1778 = vmatmul.mubr.f32.gmra.mrb[10].mxu1 %v2450_v61  ;;  %1901 = vmatmul.mubr.msk.f32.gmra.mrb[12].mxu0 %vm177_vm0, %v2465_v12 }
 0x1a8   :  { %1780 = vmatprep.mubr.f32.mxu1 %v2460_v7  ;;  %1903 = vmatprep.mubr.msk.f32.mxu0 %vm177_vm0, %v2475_v34 }
 0x1ab   :  { %1781 = vmatmul.mubr.f32.gmra.mrb[12].mxu1 %v2470_v27  ;;  %1904 = vmatmul.mubr.msk.f32.gmra.mrb[14].mxu0 %vm177_vm0, %v2485_v50 }
 0x1ac   :  { %1783 = vmatprep.mubr.f32.mxu1 %v2480_v43 }
 0x1af   :  { %1784 = vmatmul.mubr.f32.gmra.mrb[14].mxu1 %v2490_v45 }
 0x262   :  { %v1884_v6 = vpop.f32.mrb[0].mxu0 }
 0x263   :  { %v1314_v11 = vpop.f32.mrb[1].mxu0 }
 0x266   :  { %v1764_v17 = vpop.f32.mrb[0].mxu1  ;;  %v1887_v23 = vpop.f32.mrb[2].mxu0 }
 0x267   :  { %v2002_v16 = vadd.f32 %v1884_v6, %v1764_v17  ;;  %v744_v18 = vpop.f32.mrb[1].mxu1  ;;  %v1326_v20 = vpop.f32.mrb[3].mxu0 }
 0x268   :  { %v2003_v19 = vadd.f32 %v1314_v11, %v744_v18 }
 0x269   :  { %v1409_v26 = vmul.f32 11.313708, %v2002_v16 }
 0x26a   :  { %v1408_v28 = vmul.f32 11.313708, %v2003_v19  ;;  %v1767_v30 = vpop.f32.mrb[2].mxu1  ;;  %v1890_v33 = vpop.f32.mrb[4].mxu0 }
 0x26b   :  { %1425 = vst [vmem:[#allocation7 + $0x8] sm:$0xff] %v1409_v26  ;;  %v2004_v36 = vadd.f32 %v1887_v23, %v1767_v30  ;;  %v758_v40 = vpop.f32.mrb[3].mxu1  ;;  %v1338_v44 = vpop.f32.mrb[5].mxu0 }
 0x26c   :  { %1424 = vst [vmem:[#allocation7] sm:$0xff] %v1408_v28  ;;  %v2005_v49 = vadd.f32 %v1326_v20, %v758_v40 }
 0x26d   :  { %v1411_v41 = vmul.f32 11.313708, %v2004_v36 }
 0x26e   :  { %v1410_v56 = vmul.f32 11.313708, %v2005_v49  ;;  %v1770_v53 = vpop.f32.mrb[4].mxu1  ;;  %v1893_v62 = vpop.f32.mrb[6].mxu0 }
 0x26f   :  { %1427 = vst [vmem:[#allocation7 + $0x18] sm:$0xff] %v1411_v41  ;;  %v2006_v0 = vadd.f32 %v1890_v33, %v1770_v53  ;;  %v772_v4 = vpop.f32.mrb[5].mxu1  ;;  %v1350_v8 = vpop.f32.mrb[7].mxu0 }
 0x270   :  { %1426 = vst [vmem:[#allocation7 + $0x10] sm:$0xff] %v1410_v56  ;;  %v2007_v13 = vadd.f32 %v1338_v44, %v772_v4 }
 0x271   :  { %v1413_v15 = vmul.f32 11.313708, %v2006_v0 }
 0x272   :  { %v1412_v31 = vmul.f32 11.313708, %v2007_v13  ;;  %v1773_v35 = vpop.f32.mrb[6].mxu1  ;;  %v1896_v42 = vpop.f32.mrb[8].mxu0 }
 0x273   :  { %1429 = vst [vmem:[#allocation7 + $0x28] sm:$0xff] %v1413_v15  ;;  %v2008_v47 = vadd.f32 %v1893_v62, %v1773_v35  ;;  %v786_v52 = vpop.f32.mrb[7].mxu1  ;;  %v1362_v57 = vpop.f32.mrb[9].mxu0 }
 0x274   :  { %1428 = vst [vmem:[#allocation7 + $0x20] sm:$0xff] %v1412_v31  ;;  %v2009_v61 = vadd.f32 %v1350_v8, %v786_v52 }
 0x275   :  { %v1415_v59 = vmul.f32 11.313708, %v2008_v47 }
 0x276   :  { %v1414_v1 = vmul.f32 11.313708, %v2009_v61  ;;  %v1776_v2 = vpop.f32.mrb[8].mxu1  ;;  %v1899_v3 = vpop.f32.mrb[10].mxu0 }
 0x277   :  { %1431 = vst [vmem:[#allocation7 + $0x38] sm:$0xff] %v1415_v59  ;;  %v2010_v5 = vadd.f32 %v1896_v42, %v1776_v2  ;;  %v800_v7 = vpop.f32.mrb[9].mxu1  ;;  %v1374_v9 = vpop.f32.mrb[11].mxu0 }
 0x278   :  { %1430 = vst [vmem:[#allocation7 + $0x30] sm:$0xff] %v1414_v1  ;;  %v2011_v10 = vadd.f32 %v1362_v57, %v800_v7 }
 0x279   :  { %v1417_v12 = vmul.f32 11.313708, %v2010_v5 }
 0x27a   :  { %v1416_v14 = vmul.f32 11.313708, %v2011_v10  ;;  %v1779_v21 = vpop.f32.mrb[10].mxu1  ;;  %v1902_v24 = vpop.f32.mrb[12].mxu0 }
 0x27b   :  { %1433 = vst [vmem:[#allocation7 + $0x48] sm:$0xff] %v1417_v12  ;;  %v2012_v27 = vadd.f32 %v1899_v3, %v1779_v21  ;;  %v814_v29 = vpop.f32.mrb[11].mxu1  ;;  %v1386_v32 = vpop.f32.mrb[13].mxu0 }
 0x27c   :  { %1432 = vst [vmem:[#allocation7 + $0x40] sm:$0xff] %v1416_v14  ;;  %v2013_v34 = vadd.f32 %v1374_v9, %v814_v29 }
 0x27d   :  { %v1419_v37 = vmul.f32 11.313708, %v2012_v27 }
 0x27e   :  { %v1418_v38 = vmul.f32 11.313708, %v2013_v34  ;;  %v1782_v39 = vpop.f32.mrb[12].mxu1  ;;  %v1905_v43 = vpop.f32.mrb[14].mxu0 }
 0x27f   :  { %1435 = vst [vmem:[#allocation7 + $0x58] sm:$0xff] %v1419_v37  ;;  %v2014_v46 = vadd.f32 %v1902_v24, %v1782_v39  ;;  %v828_v48 = vpop.f32.mrb[13].mxu1  ;;  %v1398_v50 = vpop.f32.mrb[15].mxu0 }
 0x280   :  { %1434 = vst [vmem:[#allocation7 + $0x50] sm:$0xff] %v1418_v38  ;;  %v2015_v51 = vadd.f32 %v1386_v32, %v828_v48 }
 0x281   :  { %v1421_v54 = vmul.f32 11.313708, %v2014_v46 }
 0x282   :  { %v1420_v55 = vmul.f32 11.313708, %v2015_v51  ;;  %v1785_v45 = vpop.f32.mrb[14].mxu1 }
 0x283   :  { %1437 = vst [vmem:[#allocation7 + $0x68] sm:$0xff] %v1421_v54  ;;  %v2016_v58 = vadd.f32 %v1905_v43, %v1785_v45  ;;  %v842_v60 = vpop.f32.mrb[15].mxu1 }
 0x284   :  { %1436 = vst [vmem:[#allocation7 + $0x60] sm:$0xff] %v1420_v55  ;;  %v2017_v63 = vadd.f32 %v1398_v50, %v842_v60 }
 0x285   :  { %v1423_v22 = vmul.f32 11.313708, %v2016_v58 }
 0x286   :  { %v1422_v25 = vmul.f32 11.313708, %v2017_v63 }
 0x287   :  { %1439 = vst [vmem:[#allocation7 + $0x78] sm:$0xff] %v1423_v22 }
 0x288   :  { %1438 = vst [vmem:[#allocation7 + $0x70] sm:$0xff] %v1422_v25 }
 0x289   :  { %2146 = shalt.err (!%p2143_p6)
}
 0x28a   :  { %s2147_s10 = scalar_lea.hbm %s2638_s2, 2048 }
 0x28b   :  { %p2148_p7 = scmp.ne.s32.totalorder %s2638_s2, %s2147_s10  ;;  %p2151_p8 = scmp.lt.u32.totalorder %s2147_s10, %s2638_s2 }
 0x28d   :  { %p2153_p9 = pnand %p2151_p8, %p2148_p7 }
 0x28f   :  { %2156 = shalt.err (!%p2153_p9)
}
 0x290   :  { %1451 = dma.vmem_to_hbm [thread:$0]  %s1446_s6, 2048, %s2638_s2, [#allocation4], %s2165_s0, %s2165_s0, %s2166_s3  }
 0x291   :  { %2161 = dma.done.wait [#allocation4], 2048  }
 0x292   :  { %2162 = vsyncadd [#allocation4], 4294965248 }
 0x293   :  { %1455 = vsyncpa [#allocation3], 1 }
 0x294   :  { %1456 = vsyncpa [#allocation6], 1 }
 0x295   :  { %1457 = vsyncpa [#allocation4], 1 }

</bundles_post_ra>
